<compile_context>
chip_gen: v7x
topology: tpu7x:2x2x1
jax: 0.10.0
libtpu: 0.0.40
codegen_flags: <defaults>
</compile_context>

<pallas_src>
from functools import partial

import jax
import jax.numpy as jnp
from jax.experimental import pallas as pl
from jax.experimental.pallas import tpu as pltpu


def _round_up(x, m):
    return (x + m - 1) // m * m


def literal_embeddings_kernel(
    e_ref, a_ref,                                   # (TB, D) bf16 activations
    wfc_e_ref, wfc_a_ref, bfc_ref,                  # fc (rows split e|a), bias f32
    gamma_ref, beta_ref,                            # LayerNorm affine, f32
    wvz_ref, wve_ref, wva_ref, bval_ref,            # gated_residual "value" half
    wgz_ref, wge_ref, wga_ref, bgate_ref,           # gated_residual "gate" half
    wout_ref, bout_ref,                             # fc_out as (1,H) row + (1,1) bias
    out_ref,                                        # (TB, 1) f32
):
    e = e_ref[...]                                  # (TB, D) bf16
    a = a_ref[...]                                  # (TB, D) bf16

    # fc: h = [e, a] @ W_fc + b   (rows of W_fc pre-split in the wrapper)
    h = (jnp.dot(e, wfc_e_ref[...], preferred_element_type=jnp.float32)
         + jnp.dot(a, wfc_a_ref[...], preferred_element_type=jnp.float32)
         + bfc_ref[...])                            # (TB, H) f32

    # LayerNorm over last dim (eps=1e-5, PyTorch default), f32 math, reuse (h - mu)
    mu = jnp.mean(h, axis=-1, keepdims=True)
    hc = h - mu
    var = jnp.mean(hc * hc, axis=-1, keepdims=True)
    hn = hc * jax.lax.rsqrt(var + 1e-5) * gamma_ref[...] + beta_ref[...]

    # ReLU (dropout is identity at inference)
    z = jnp.maximum(hn, 0.0).astype(e.dtype)        # bf16 for the MXU

    # gated residual: x_proj = [z, e, a] @ W_gr + b_gr, columns pre-split value|gate
    value = (jnp.dot(z, wvz_ref[...], preferred_element_type=jnp.float32)
             + jnp.dot(e, wve_ref[...], preferred_element_type=jnp.float32)
             + jnp.dot(a, wva_ref[...], preferred_element_type=jnp.float32)
             + bval_ref[...])
    gate = (jnp.dot(z, wgz_ref[...], preferred_element_type=jnp.float32)
            + jnp.dot(e, wge_ref[...], preferred_element_type=jnp.float32)
            + jnp.dot(a, wga_ref[...], preferred_element_type=jnp.float32)
            + bgate_ref[...])
    residual = value * jax.nn.sigmoid(gate)         # (TB, H) f32

    # fc_out (single output column): VPU mul + lane reduce instead of an N=1 matmul
    out = jnp.sum(residual * wout_ref[...], axis=-1, keepdims=True) + bout_ref[...]
    out_ref[...] = out.astype(out_ref.dtype)


@partial(jax.jit, static_argnames=("block_b",))
def literal_embeddings_forward(entity_idx, attr_idx, params, block_b=512):
    """Embedding gathers in XLA; fused MLP hot path in one pipelined Pallas kernel."""
    compute_dtype = jnp.bfloat16                    # bf16 matmuls, f32 accumulation

    D = params["entity_emb"].shape[1]
    H = 2 * D

    # Gathers (XLA); no concat -- e/a are streamed separately into the kernel.
    e_emb = jnp.take(params["entity_emb"], entity_idx, axis=0).astype(compute_dtype)
    a_emb = jnp.take(params["data_prop_emb"], attr_idx, axis=0).astype(compute_dtype)
    B = e_emb.shape[0]

    # Batch tile: multiple of 16 sublanes (a full-MXU-M multiple for large B),
    # padded batch; padded rows are sliced off after the kernel.
    tb = min(block_b, _round_up(B, 16))
    b_pad = _round_up(B, tb)
    if b_pad != B:
        pad = ((0, b_pad - B), (0, 0))
        e_emb = jnp.pad(e_emb, pad)
        a_emb = jnp.pad(a_emb, pad)

    # Pre-split weights in the wrapper (zero-cost layout plumbing):
    #   w_fc rows: [e | a];  w_gr rows: [z | e | a], columns: [value | gate].
    w_fc, w_gr = params["w_fc"], params["w_gr"]
    wfc_e = w_fc[:D].astype(compute_dtype)
    wfc_a = w_fc[D:].astype(compute_dtype)
    wvz = w_gr[:H, :H].astype(compute_dtype)
    wve = w_gr[H:H + D, :H].astype(compute_dtype)
    wva = w_gr[H + D:, :H].astype(compute_dtype)
    wgz = w_gr[:H, H:].astype(compute_dtype)
    wge = w_gr[H:H + D, H:].astype(compute_dtype)
    wga = w_gr[H + D:, H:].astype(compute_dtype)
    b_val = params["b_gr"][:, :H]
    b_gate = params["b_gr"][:, H:]
    w_out_row = params["w_out"].reshape(1, H)       # (H,1) -> lane-dense (1,H), f32

    weights = (wfc_e, wfc_a, params["b_fc"], params["ln_gamma"], params["ln_beta"],
               wvz, wve, wva, b_val, wgz, wge, wga, b_gate,
               w_out_row, params["b_out"])

    num_tiles = b_pad // tb
    act_spec = pl.BlockSpec((tb, D), lambda i: (i, 0))
    resident = lambda arr: pl.BlockSpec(arr.shape, lambda i: (0, 0))  # stays in VMEM

    out = pl.pallas_call(
        literal_embeddings_kernel,
        out_shape=jax.ShapeDtypeStruct((b_pad, 1), jnp.float32),
        grid=(num_tiles,),
        in_specs=[act_spec, act_spec] + [resident(w) for w in weights],
        out_specs=pl.BlockSpec((tb, 1), lambda i: (i, 0)),
        compiler_params=pltpu.CompilerParams(
            dimension_semantics=("parallel",),       # megacore sharding on v7x
            vmem_limit_bytes=32 * 1024 * 1024,       # sized against v7x's 64 MiB VMEM
        ),
    )(e_emb, a_emb, *weights)

    return out[:B, 0]                                # drop padded rows -> (B,)


def init_params(key, num_entities, num_props, embedding_dim):
    H = embedding_dim * 2
    ks = jax.random.split(key, 8)
    scale = 0.02
    return {
        "entity_emb":    scale * jax.random.normal(ks[0], (num_entities, embedding_dim), jnp.float32),
        "data_prop_emb": scale * jax.random.normal(ks[1], (num_props, embedding_dim), jnp.float32),
        "w_fc":          scale * jax.random.normal(ks[2], (H, H), jnp.float32),
        "b_fc":          jnp.zeros((1, H), jnp.float32),
        "ln_gamma":      jnp.ones((1, H), jnp.float32),
        "ln_beta":       jnp.zeros((1, H), jnp.float32),
        "w_gr":          scale * jax.random.normal(ks[3], (2 * H, 2 * H), jnp.float32),
        "b_gr":          jnp.zeros((1, 2 * H), jnp.float32),
        "w_out":         scale * jax.random.normal(ks[4], (H, 1), jnp.float32),
        "b_out":         jnp.zeros((1, 1), jnp.float32),
    }


def reference_forward(entity_idx, attr_idx, params):
    """Pure-JAX f32 reference mirroring the PyTorch module (eval mode)."""
    e = jnp.take(params["entity_emb"], entity_idx, axis=0)
    a = jnp.take(params["data_prop_emb"], attr_idx, axis=0)
    x = jnp.concatenate([e, a], axis=1)
    H = x.shape[-1]
    h = x @ params["w_fc"] + params["b_fc"]
    mu = jnp.mean(h, axis=-1, keepdims=True)
    var = jnp.mean((h - mu) ** 2, axis=-1, keepdims=True)
    hn = (h - mu) / jnp.sqrt(var + 1e-5) * params["ln_gamma"] + params["ln_beta"]
    z = jnp.maximum(hn, 0.0)
    x_proj = jnp.concatenate([z, x], axis=-1) @ params["w_gr"] + params["b_gr"]
    value, gate = x_proj[:, :H], x_proj[:, H:]
    residual = value * jax.nn.sigmoid(gate)
    return (residual @ params["w_out"] + params["b_out"]).reshape(-1)


if __name__ == "__main__":
    key = jax.random.PRNGKey(0)
    k_params, k_ent, k_attr = jax.random.split(key, 3)

    num_entities = 20
    num_props = 5
    embedding_dim = 32      # D
    batch = 8               # B  (hidden H = 2*D = 64) -- toy size; Pallas pays off at B >> 1k

    params = init_params(k_params, num_entities, num_props, embedding_dim)
    entity_idx = jax.random.randint(k_ent, (batch,), 0, num_entities, dtype=jnp.int32)
    attr_idx = jax.random.randint(k_attr, (batch,), 0, num_props, dtype=jnp.int32)

    out = literal_embeddings_forward(entity_idx, attr_idx, params)
    out = jax.block_until_ready(out)

    ref = reference_forward(entity_idx, attr_idx, params)
    assert out.shape == (batch,)
    # bf16 matmul operands vs f32 reference -> loosened tolerance
    assert jnp.allclose(out, ref, atol=2e-2, rtol=2e-2), (out, ref)

    print("KERNEL_OK")
</pallas_src>

<mosaic_0001>
module attributes {stable_mosaic.version = 11 : i64} {
  func.func @literal_embeddings_kernel(%arg0: i32, %arg1: memref<16x32xbf16, #tpu.memory_space<vmem>>, %arg2: memref<16x32xbf16, #tpu.memory_space<vmem>>, %arg3: memref<32x64xbf16, #tpu.memory_space<vmem>>, %arg4: memref<32x64xbf16, #tpu.memory_space<vmem>>, %arg5: memref<1x64xf32, #tpu.memory_space<vmem>>, %arg6: memref<1x64xf32, #tpu.memory_space<vmem>>, %arg7: memref<1x64xf32, #tpu.memory_space<vmem>>, %arg8: memref<64x64xbf16, #tpu.memory_space<vmem>>, %arg9: memref<32x64xbf16, #tpu.memory_space<vmem>>, %arg10: memref<32x64xbf16, #tpu.memory_space<vmem>>, %arg11: memref<1x64xf32, #tpu.memory_space<vmem>>, %arg12: memref<64x64xbf16, #tpu.memory_space<vmem>>, %arg13: memref<32x64xbf16, #tpu.memory_space<vmem>>, %arg14: memref<32x64xbf16, #tpu.memory_space<vmem>>, %arg15: memref<1x64xf32, #tpu.memory_space<vmem>>, %arg16: memref<1x64xf32, #tpu.memory_space<vmem>>, %arg17: memref<1x1xf32, #tpu.memory_space<vmem>>, %arg18: memref<16x1xf32, #tpu.memory_space<vmem>>) attributes {dimension_semantics = [#tpu.dimension_semantics<parallel>], iteration_bounds = array<i64: 1>, scalar_prefetch = 0 : i64, scratch_operands = 0 : i64, tpu.core_type = #tpu.core_type<tc>, window_params = [{transform_indices = @transform_0, window_bounds = array<i64: 16, 32>}, {transform_indices = @transform_1, window_bounds = array<i64: 16, 32>}, {pipeline_mode = #tpu.pipeline_mode<synchronous>, transform_indices = @transform_2, window_bounds = array<i64: 32, 64>}, {pipeline_mode = #tpu.pipeline_mode<synchronous>, transform_indices = @transform_3, window_bounds = array<i64: 32, 64>}, {pipeline_mode = #tpu.pipeline_mode<synchronous>, transform_indices = @transform_4, window_bounds = array<i64: 1, 64>}, {pipeline_mode = #tpu.pipeline_mode<synchronous>, transform_indices = @transform_5, window_bounds = array<i64: 1, 64>}, {pipeline_mode = #tpu.pipeline_mode<synchronous>, transform_indices = @transform_6, window_bounds = array<i64: 1, 64>}, {pipeline_mode = #tpu.pipeline_mode<synchronous>, transform_indices = @transform_7, window_bounds = array<i64: 64, 64>}, {pipeline_mode = #tpu.pipeline_mode<synchronous>, transform_indices = @transform_8, window_bounds = array<i64: 32, 64>}, {pipeline_mode = #tpu.pipeline_mode<synchronous>, transform_indices = @transform_9, window_bounds = array<i64: 32, 64>}, {pipeline_mode = #tpu.pipeline_mode<synchronous>, transform_indices = @transform_10, window_bounds = array<i64: 1, 64>}, {pipeline_mode = #tpu.pipeline_mode<synchronous>, transform_indices = @transform_11, window_bounds = array<i64: 64, 64>}, {pipeline_mode = #tpu.pipeline_mode<synchronous>, transform_indices = @transform_12, window_bounds = array<i64: 32, 64>}, {pipeline_mode = #tpu.pipeline_mode<synchronous>, transform_indices = @transform_13, window_bounds = array<i64: 32, 64>}, {pipeline_mode = #tpu.pipeline_mode<synchronous>, transform_indices = @transform_14, window_bounds = array<i64: 1, 64>}, {pipeline_mode = #tpu.pipeline_mode<synchronous>, transform_indices = @transform_15, window_bounds = array<i64: 1, 64>}, {pipeline_mode = #tpu.pipeline_mode<synchronous>, transform_indices = @transform_16, window_bounds = array<i64: 1, 1>}, {transform_indices = @transform_17, window_bounds = array<i64: 16, 1>}]} {
    %c0 = arith.constant 0 : index
    %c0_0 = arith.constant 0 : index
    %0 = vector.load %arg1[%c0, %c0_0] : memref<16x32xbf16, #tpu.memory_space<vmem>>, vector<16x32xbf16>
    %c0_1 = arith.constant 0 : index
    %c0_2 = arith.constant 0 : index
    %1 = vector.load %arg2[%c0_1, %c0_2] : memref<16x32xbf16, #tpu.memory_space<vmem>>, vector<16x32xbf16>
    %c0_3 = arith.constant 0 : index
    %c0_4 = arith.constant 0 : index
    %2 = vector.load %arg3[%c0_3, %c0_4] : memref<32x64xbf16, #tpu.memory_space<vmem>>, vector<32x64xbf16>
    %cst = arith.constant dense<0.000000e+00> : vector<16x64xf32>
    %3 = tpu.matmul %0, %2, %cst {dimension_numbers = #tpu.dot_dimension_numbers<[1], [0], [0], [1], [0, 0, 1, 1], [], []>} : vector<16x32xbf16>, vector<32x64xbf16>, vector<16x64xf32> -> vector<16x64xf32>
    %c0_5 = arith.constant 0 : index
    %c0_6 = arith.constant 0 : index
    %4 = vector.load %arg4[%c0_5, %c0_6] : memref<32x64xbf16, #tpu.memory_space<vmem>>, vector<32x64xbf16>
    %cst_7 = arith.constant dense<0.000000e+00> : vector<16x64xf32>
    %5 = tpu.matmul %1, %4, %cst_7 {dimension_numbers = #tpu.dot_dimension_numbers<[1], [0], [0], [1], [0, 0, 1, 1], [], []>} : vector<16x32xbf16>, vector<32x64xbf16>, vector<16x64xf32> -> vector<16x64xf32>
    %6 = arith.addf %3, %5 : vector<16x64xf32>
    %c0_8 = arith.constant 0 : index
    %c0_9 = arith.constant 0 : index
    %7 = vector.load %arg5[%c0_8, %c0_9] : memref<1x64xf32, #tpu.memory_space<vmem>>, vector<1x64xf32>
    %8 = vector.broadcast %7 : vector<1x64xf32> to vector<16x64xf32>
    %9 = arith.addf %6, %8 : vector<16x64xf32>
    %cst_10 = arith.constant dense<0.000000e+00> : vector<16xf32>
    %10 = vector.multi_reduction <add>, %9, %cst_10 [1] : vector<16x64xf32> to vector<16xf32>
    %11 = vector.shape_cast %10 : vector<16xf32> to vector<16x1xf32>
    %cst_11 = arith.constant 6.400000e+01 : f32
    %12 = vector.broadcast %cst_11 : f32 to vector<16x1xf32>
    %13 = arith.divf %11, %12 : vector<16x1xf32>
    %14 = vector.broadcast %13 : vector<16x1xf32> to vector<16x64xf32>
    %15 = arith.subf %9, %14 : vector<16x64xf32>
    %16 = arith.mulf %15, %15 : vector<16x64xf32>
    %cst_12 = arith.constant dense<0.000000e+00> : vector<16xf32>
    %17 = vector.multi_reduction <add>, %16, %cst_12 [1] : vector<16x64xf32> to vector<16xf32>
    %18 = vector.shape_cast %17 : vector<16xf32> to vector<16x1xf32>
    %cst_13 = arith.constant 6.400000e+01 : f32
    %19 = vector.broadcast %cst_13 : f32 to vector<16x1xf32>
    %20 = arith.divf %18, %19 : vector<16x1xf32>
    %cst_14 = arith.constant 9.99999974E-6 : f32
    %21 = vector.broadcast %cst_14 : f32 to vector<16x1xf32>
    %22 = arith.addf %20, %21 : vector<16x1xf32>
    %23 = math.rsqrt %22 : vector<16x1xf32>
    %24 = vector.broadcast %23 : vector<16x1xf32> to vector<16x64xf32>
    %25 = arith.mulf %15, %24 : vector<16x64xf32>
    %c0_15 = arith.constant 0 : index
    %c0_16 = arith.constant 0 : index
    %26 = vector.load %arg6[%c0_15, %c0_16] : memref<1x64xf32, #tpu.memory_space<vmem>>, vector<1x64xf32>
    %27 = vector.broadcast %26 : vector<1x64xf32> to vector<16x64xf32>
    %28 = arith.mulf %25, %27 : vector<16x64xf32>
    %c0_17 = arith.constant 0 : index
    %c0_18 = arith.constant 0 : index
    %29 = vector.load %arg7[%c0_17, %c0_18] : memref<1x64xf32, #tpu.memory_space<vmem>>, vector<1x64xf32>
    %30 = vector.broadcast %29 : vector<1x64xf32> to vector<16x64xf32>
    %31 = arith.addf %28, %30 : vector<16x64xf32>
    %cst_19 = arith.constant 0.000000e+00 : f32
    %32 = vector.broadcast %cst_19 : f32 to vector<16x64xf32>
    %33 = arith.maximumf %31, %32 : vector<16x64xf32>
    %34 = arith.truncf %33 : vector<16x64xf32> to vector<16x64xbf16>
    %c0_20 = arith.constant 0 : index
    %c0_21 = arith.constant 0 : index
    %35 = vector.load %arg8[%c0_20, %c0_21] : memref<64x64xbf16, #tpu.memory_space<vmem>>, vector<64x64xbf16>
    %cst_22 = arith.constant dense<0.000000e+00> : vector<16x64xf32>
    %36 = tpu.matmul %34, %35, %cst_22 {dimension_numbers = #tpu.dot_dimension_numbers<[1], [0], [0], [1], [0, 0, 1, 1], [], []>} : vector<16x64xbf16>, vector<64x64xbf16>, vector<16x64xf32> -> vector<16x64xf32>
    %c0_23 = arith.constant 0 : index
    %c0_24 = arith.constant 0 : index
    %37 = vector.load %arg9[%c0_23, %c0_24] : memref<32x64xbf16, #tpu.memory_space<vmem>>, vector<32x64xbf16>
    %cst_25 = arith.constant dense<0.000000e+00> : vector<16x64xf32>
    %38 = tpu.matmul %0, %37, %cst_25 {dimension_numbers = #tpu.dot_dimension_numbers<[1], [0], [0], [1], [0, 0, 1, 1], [], []>} : vector<16x32xbf16>, vector<32x64xbf16>, vector<16x64xf32> -> vector<16x64xf32>
    %39 = arith.addf %36, %38 : vector<16x64xf32>
    %c0_26 = arith.constant 0 : index
    %c0_27 = arith.constant 0 : index
    %40 = vector.load %arg10[%c0_26, %c0_27] : memref<32x64xbf16, #tpu.memory_space<vmem>>, vector<32x64xbf16>
    %cst_28 = arith.constant dense<0.000000e+00> : vector<16x64xf32>
    %41 = tpu.matmul %1, %40, %cst_28 {dimension_numbers = #tpu.dot_dimension_numbers<[1], [0], [0], [1], [0, 0, 1, 1], [], []>} : vector<16x32xbf16>, vector<32x64xbf16>, vector<16x64xf32> -> vector<16x64xf32>
    %42 = arith.addf %39, %41 : vector<16x64xf32>
    %c0_29 = arith.constant 0 : index
    %c0_30 = arith.constant 0 : index
    %43 = vector.load %arg11[%c0_29, %c0_30] : memref<1x64xf32, #tpu.memory_space<vmem>>, vector<1x64xf32>
    %44 = vector.broadcast %43 : vector<1x64xf32> to vector<16x64xf32>
    %45 = arith.addf %42, %44 : vector<16x64xf32>
    %c0_31 = arith.constant 0 : index
    %c0_32 = arith.constant 0 : index
    %46 = vector.load %arg12[%c0_31, %c0_32] : memref<64x64xbf16, #tpu.memory_space<vmem>>, vector<64x64xbf16>
    %cst_33 = arith.constant dense<0.000000e+00> : vector<16x64xf32>
    %47 = tpu.matmul %34, %46, %cst_33 {dimension_numbers = #tpu.dot_dimension_numbers<[1], [0], [0], [1], [0, 0, 1, 1], [], []>} : vector<16x64xbf16>, vector<64x64xbf16>, vector<16x64xf32> -> vector<16x64xf32>
    %c0_34 = arith.constant 0 : index
    %c0_35 = arith.constant 0 : index
    %48 = vector.load %arg13[%c0_34, %c0_35] : memref<32x64xbf16, #tpu.memory_space<vmem>>, vector<32x64xbf16>
    %cst_36 = arith.constant dense<0.000000e+00> : vector<16x64xf32>
    %49 = tpu.matmul %0, %48, %cst_36 {dimension_numbers = #tpu.dot_dimension_numbers<[1], [0], [0], [1], [0, 0, 1, 1], [], []>} : vector<16x32xbf16>, vector<32x64xbf16>, vector<16x64xf32> -> vector<16x64xf32>
    %50 = arith.addf %47, %49 : vector<16x64xf32>
    %c0_37 = arith.constant 0 : index
    %c0_38 = arith.constant 0 : index
    %51 = vector.load %arg14[%c0_37, %c0_38] : memref<32x64xbf16, #tpu.memory_space<vmem>>, vector<32x64xbf16>
    %cst_39 = arith.constant dense<0.000000e+00> : vector<16x64xf32>
    %52 = tpu.matmul %1, %51, %cst_39 {dimension_numbers = #tpu.dot_dimension_numbers<[1], [0], [0], [1], [0, 0, 1, 1], [], []>} : vector<16x32xbf16>, vector<32x64xbf16>, vector<16x64xf32> -> vector<16x64xf32>
    %53 = arith.addf %50, %52 : vector<16x64xf32>
    %c0_40 = arith.constant 0 : index
    %c0_41 = arith.constant 0 : index
    %54 = vector.load %arg15[%c0_40, %c0_41] : memref<1x64xf32, #tpu.memory_space<vmem>>, vector<1x64xf32>
    %55 = vector.broadcast %54 : vector<1x64xf32> to vector<16x64xf32>
    %56 = arith.addf %53, %55 : vector<16x64xf32>
    %57 = arith.negf %56 : vector<16x64xf32>
    %58 = math.exp %57 : vector<16x64xf32>
    %cst_42 = arith.constant 1.000000e+00 : f32
    %59 = vector.broadcast %cst_42 : f32 to vector<16x64xf32>
    %60 = arith.addf %59, %58 : vector<16x64xf32>
    %61 = arith.divf %59, %60 : vector<16x64xf32>
    %62 = arith.mulf %45, %61 : vector<16x64xf32>
    %c0_43 = arith.constant 0 : index
    %c0_44 = arith.constant 0 : index
    %63 = vector.load %arg16[%c0_43, %c0_44] : memref<1x64xf32, #tpu.memory_space<vmem>>, vector<1x64xf32>
    %64 = vector.broadcast %63 : vector<1x64xf32> to vector<16x64xf32>
    %65 = arith.mulf %62, %64 : vector<16x64xf32>
    %cst_45 = arith.constant dense<0.000000e+00> : vector<16xf32>
    %66 = vector.multi_reduction <add>, %65, %cst_45 [1] : vector<16x64xf32> to vector<16xf32>
    %67 = vector.shape_cast %66 : vector<16xf32> to vector<16x1xf32>
    %c0_46 = arith.constant 0 : index
    %c0_47 = arith.constant 0 : index
    %68 = vector.load %arg17[%c0_46, %c0_47] : memref<1x1xf32, #tpu.memory_space<vmem>>, vector<1x1xf32>
    %69 = vector.broadcast %68 : vector<1x1xf32> to vector<16x1xf32>
    %70 = arith.addf %67, %69 : vector<16x1xf32>
    %c0_48 = arith.constant 0 : index
    %c0_49 = arith.constant 0 : index
    %71 = vector.load %arg18[%c0_48, %c0_49] : memref<16x1xf32, #tpu.memory_space<vmem>>, vector<16x1xf32>
    tpu.vector_store %arg18[%c0_48, %c0_49], %70 {strides = array<i32>} : memref<16x1xf32, #tpu.memory_space<vmem>>, vector<16x1xf32>,
    return
  }
  func.func @transform_0(%arg0: i32) -> (i32, i32) {
    %c0_i32 = arith.constant 0 : i32
    %c0_i32_0 = arith.constant 0 : i32
    return %arg0, %c0_i32 : i32, i32
  }
  func.func @transform_1(%arg0: i32) -> (i32, i32) {
    %c0_i32 = arith.constant 0 : i32
    %c0_i32_0 = arith.constant 0 : i32
    return %arg0, %c0_i32 : i32, i32
  }
  func.func @transform_2(%arg0: i32) -> (i32, i32) {
    %c0_i32 = arith.constant 0 : i32
    %c0_i32_0 = arith.constant 0 : i32
    %c0_i32_1 = arith.constant 0 : i32
    return %c0_i32, %c0_i32_0 : i32, i32
  }
  func.func @transform_3(%arg0: i32) -> (i32, i32) {
    %c0_i32 = arith.constant 0 : i32
    %c0_i32_0 = arith.constant 0 : i32
    %c0_i32_1 = arith.constant 0 : i32
    return %c0_i32, %c0_i32_0 : i32, i32
  }
  func.func @transform_4(%arg0: i32) -> (i32, i32) {
    %c0_i32 = arith.constant 0 : i32
    %c0_i32_0 = arith.constant 0 : i32
    %c0_i32_1 = arith.constant 0 : i32
    return %c0_i32, %c0_i32_0 : i32, i32
  }
  func.func @transform_5(%arg0: i32) -> (i32, i32) {
    %c0_i32 = arith.constant 0 : i32
    %c0_i32_0 = arith.constant 0 : i32
    %c0_i32_1 = arith.constant 0 : i32
    return %c0_i32, %c0_i32_0 : i32, i32
  }
  func.func @transform_6(%arg0: i32) -> (i32, i32) {
    %c0_i32 = arith.constant 0 : i32
    %c0_i32_0 = arith.constant 0 : i32
    %c0_i32_1 = arith.constant 0 : i32
    return %c0_i32, %c0_i32_0 : i32, i32
  }
  func.func @transform_7(%arg0: i32) -> (i32, i32) {
    %c0_i32 = arith.constant 0 : i32
    %c0_i32_0 = arith.constant 0 : i32
    %c0_i32_1 = arith.constant 0 : i32
    return %c0_i32, %c0_i32_0 : i32, i32
  }
  func.func @transform_8(%arg0: i32) -> (i32, i32) {
    %c0_i32 = arith.constant 0 : i32
    %c0_i32_0 = arith.constant 0 : i32
    %c0_i32_1 = arith.constant 0 : i32
    return %c0_i32, %c0_i32_0 : i32, i32
  }
  func.func @transform_9(%arg0: i32) -> (i32, i32) {
    %c0_i32 = arith.constant 0 : i32
    %c0_i32_0 = arith.constant 0 : i32
    %c0_i32_1 = arith.constant 0 : i32
    return %c0_i32, %c0_i32_0 : i32, i32
  }
  func.func @transform_10(%arg0: i32) -> (i32, i32) {
    %c0_i32 = arith.constant 0 : i32
    %c0_i32_0 = arith.constant 0 : i32
    %c0_i32_1 = arith.constant 0 : i32
    return %c0_i32, %c0_i32_0 : i32, i32
  }
  func.func @transform_11(%arg0: i32) -> (i32, i32) {
    %c0_i32 = arith.constant 0 : i32
    %c0_i32_0 = arith.constant 0 : i32
    %c0_i32_1 = arith.constant 0 : i32
    return %c0_i32, %c0_i32_0 : i32, i32
  }
  func.func @transform_12(%arg0: i32) -> (i32, i32) {
    %c0_i32 = arith.constant 0 : i32
    %c0_i32_0 = arith.constant 0 : i32
    %c0_i32_1 = arith.constant 0 : i32
    return %c0_i32, %c0_i32_0 : i32, i32
  }
  func.func @transform_13(%arg0: i32) -> (i32, i32) {
    %c0_i32 = arith.constant 0 : i32
    %c0_i32_0 = arith.constant 0 : i32
    %c0_i32_1 = arith.constant 0 : i32
    return %c0_i32, %c0_i32_0 : i32, i32
  }
  func.func @transform_14(%arg0: i32) -> (i32, i32) {
    %c0_i32 = arith.constant 0 : i32
    %c0_i32_0 = arith.constant 0 : i32
    %c0_i32_1 = arith.constant 0 : i32
    return %c0_i32, %c0_i32_0 : i32, i32
  }
  func.func @transform_15(%arg0: i32) -> (i32, i32) {
    %c0_i32 = arith.constant 0 : i32
    %c0_i32_0 = arith.constant 0 : i32
    %c0_i32_1 = arith.constant 0 : i32
    return %c0_i32, %c0_i32_0 : i32, i32
  }
  func.func @transform_16(%arg0: i32) -> (i32, i32) {
    %c0_i32 = arith.constant 0 : i32
    %c0_i32_0 = arith.constant 0 : i32
    %c0_i32_1 = arith.constant 0 : i32
    return %c0_i32, %c0_i32_0 : i32, i32
  }
  func.func @transform_17(%arg0: i32) -> (i32, i32) {
    %c0_i32 = arith.constant 0 : i32
    %c0_i32_0 = arith.constant 0 : i32
    return %arg0, %c0_i32 : i32, i32
  }
}

</mosaic_0001>

<bundles_post_ra>
// kernel: literal_embeddings_forward.1
= control target key start
LH: loop header
LB: loop body
LE: loop exit
PB: predicated region body
PF: predicated region fallthrough
CT: control target
= control target key end

     0   :  { %v871_v0 = vmov 0.0   ;;  %vm872_vm0 = vmmov 0   ;;  %vm88_vm1 = vcmask 261120   ;;  %vm203_vm2 = vcmask 523264   ;;  %s1126_s3 = inlined_call_operand.vmem [shape: bf16[32,64], index: 3, kind: input, shape index: {}]   ;;  %s1127_s2 = inlined_call_operand.vmem [shape: bf16[32,64], index: 2, kind: input, shape index: {}]   ;;  %s1128_s1 = inlined_call_operand.vmem [shape: bf16[16,32], index: 1, kind: input, shape index: {}]   ;;  %s1129_s0 = inlined_call_operand.vmem [shape: bf16[16,32], index: 0, kind: input, shape index: {}]   ;;  %s1130_s4 = inlined_call_operand.vmem [shape: f32[1,64], index: 4, kind: input, shape index: {}]   ;;  %s1131_s8 = inlined_call_operand.vmem [shape: bf16[32,64], index: 8, kind: input, shape index: {}]   ;;  %s1132_s7 = inlined_call_operand.vmem [shape: bf16[64,64], index: 7, kind: input, shape index: {}]   ;;  %s1133_s9 = inlined_call_operand.vmem [shape: bf16[32,64], index: 9, kind: input, shape index: {}]   ;;  %s1134_s12 = inlined_call_operand.vmem [shape: bf16[32,64], index: 12, kind: input, shape index: {}]   ;;  %s1135_s11 = inlined_call_operand.vmem [shape: bf16[64,64], index: 11, kind: input, shape index: {}]   ;;  %s1136_s13 = inlined_call_operand.vmem [shape: bf16[32,64], index: 13, kind: input, shape index: {}]   ;;  %s1137_s5 = inlined_call_operand.vmem [shape: f32[1,64], index: 5, kind: input, shape index: {}]   ;;  %s1138_s6 = inlined_call_operand.vmem [shape: f32[1,64], index: 6, kind: input, shape index: {}]   ;;  %s1139_s16 = inlined_call_operand.<no memory space> [shape: f32[1,1], index: 16, kind: input, shape index: {}]   ;;  %s1140_s14 = inlined_call_operand.vmem [shape: f32[1,64], index: 14, kind: input, shape index: {}]   ;;  %s1141_s10 = inlined_call_operand.vmem [shape: f32[1,64], index: 10, kind: input, shape index: {}]   ;;  %s1142_s15 = inlined_call_operand.vmem [shape: f32[1,64], index: 15, kind: input, shape index: {}]   ;;  %s1143_s17 = inlined_call_operand.vmem [shape: f32[16,1], index: 17, kind: output, shape index: {}]  }
   0x1   :  { %1146 = sst [smem:[#allocation3_spill]] %s1126_s3  ;;  %763 = vmatprep.subr.bf16.mxu0 %v871_v0  ;;  %771 = vmatprep.subr.bf16.mxu1 %v871_v0  ;;  %v986_v5 = vld [vmem:[%s1128_s1] sm:$0xff]   ;;  %v845_v34 = vld [vmem:[%s1131_s8 + $0x8] sm:$0xff]   ;;  %v848_v37 = vld [vmem:[%s1132_s7 + $0x10] sm:$0xff]   ;;  %vm689_vm3 = vcmask 7168  }
   0x2   :  { %1147 = sst [smem:[#allocation4_spill]] %s1127_s2  ;;  %s1148_s26 = sld [smem:[#allocation3_spill]]  ;;  %767 = vmatprep.mubr.msk.bf16.mxu0 %vm872_vm0, %v871_v0  ;;  %775 = vmatprep.mubr.msk.bf16.mxu1 %vm872_vm0, %v871_v0  ;;  %v991_v6 = vld [vmem:[%s1129_s0] sm:$0xff]   ;;  %v846_v35 = vld [vmem:[%s1132_s7 + $0x8] sm:$0xff]   ;;  %v850_v39 = vld [vmem:[%s1132_s7 + $0x18] sm:$0xff]  }
   0x3   :  { %s1149_s29 = sld [smem:[#allocation4_spill]]  ;;  %v704_v10 = vld [vmem:[%s1130_s4] ss:$0 sm:$0xff]  ;;  %v849_v38 = vld [vmem:[%s1133_s9 + $0x8] sm:$0xff]  }
   0x4   :  { %v843_v32 = vld [vmem:[%s1131_s8] sm:$0xff]   ;;  %v853_v41 = vld [vmem:[%s1134_s12 + $0x8] sm:$0xff]  }
   0x5   :  { %v844_v33 = vld [vmem:[%s1132_s7] sm:$0xff]   ;;  %v857_v43 = vld [vmem:[%s1136_s13 + $0x8] sm:$0xff]  }
   0x6   :  { %v847_v36 = vld [vmem:[%s1133_s9] sm:$0xff]  }
   0x7   :  { %v851_v40 = vld [vmem:[%s1134_s12] sm:$0xff]  }
   0x8   :  { %v837_v1 = vld [vmem:[%s1148_s26] sm:$0xff]   ;;  %v839_v3 = vld [vmem:[%s1148_s26 + $0x8] sm:$0xff]  }
   0x9   :  { %v838_v2 = vld [vmem:[%s1149_s29] sm:$0xff]   ;;  %764 = vmatpush3.bf16.msra.mxu0 %v837_v1  ;;  %v840_v4 = vld [vmem:[%s1149_s29 + $0x8] sm:$0xff]  }
   0xa   :  { %772 = vmatpush3.bf16.msra.mxu1 %v838_v2  ;;  %765 = vmatprep.subr.bf16.mxu0 %v871_v0  ;;  %v855_v42 = vld [vmem:[%s1136_s13] sm:$0xff]   ;;  %v854_v1 = vld [vmem:[%s1135_s11 + $0x8] sm:$0xff]   ;;  %v856_v2 = vld [vmem:[%s1135_s11 + $0x10] sm:$0xff]  }
   0xb   :  { %773 = vmatprep.subr.bf16.mxu1 %v871_v0  ;;  %v705_v51 = vld [vmem:[%s1137_s5] ss:$0 sm:$0xff] }
   0xc   :  { %v706_v55 = vld [vmem:[%s1138_s6] ss:$0 sm:$0xff] }
   0xd   :  { %766 = vmatpush3.bf16.msra.mxu0 %v839_v3  ;;  %v852_v62 = vld [vmem:[%s1135_s11] sm:$0xff]   ;;  %v858_v3 = vld [vmem:[%s1135_s11 + $0x18] sm:$0xff]  }
   0xe   :  { %774 = vmatpush3.bf16.msra.mxu1 %v840_v4  ;;  %779 = vmatprep.subr.bf16.mxu0 %v871_v0 }
   0xf   :  { %787 = vmatprep.subr.bf16.mxu1 %v871_v0 }
  0x10   :  { %768 = vmatmul.mubr.msk.bf16.vlgmr.msra.gmra.mrb[0].mxu0 %vm88_vm1, %v986_v5 }
  0x11   :  { %776 = vmatmul.mubr.msk.bf16.vlgmr.msra.gmra.mrb[0].mxu1 %vm88_vm1, %v991_v6  ;;  %783 = vmatprep.mubr.msk.bf16.mxu0 %vm872_vm0, %v871_v0 }
  0x12   :  { %795 = vmatprep.mubr.msk.bf16.mxu1 %vm872_vm0, %v871_v0  ;;  %780 = vmatpush3.bf16.msra.mxu0 %v843_v32 }
  0x13   :  { %788 = vmatpush3.bf16.msra.mxu1 %v844_v33  ;;  %781 = vmatprep.subr.bf16.mxu0 %v871_v0 }
  0x14   :  { %789 = vmatprep.subr.bf16.mxu1 %v871_v0 }
  0x16   :  { %782 = vmatpush3.bf16.msra.mxu0 %v845_v34 }
  0x17   :  { %790 = vmatpush3.bf16.msra.mxu1 %v846_v35  ;;  %799 = vmatprep.subr.bf16.mxu0 %v871_v0 }
  0x18   :  { %791 = vmatprep.subr.bf16.mxu1 %v871_v0 }
  0x19   :  { %784 = vmatmul.mubr.msk.bf16.vlgmr.msra.gmra.mrb[4].mxu0 %vm88_vm1, %v991_v6 }
  0x1a   :  { %800 = vmatpush3.bf16.msra.mxu0 %v847_v36  ;;  %803 = vmatprep.mubr.msk.bf16.mxu0 %vm872_vm0, %v871_v0 }
  0x1b   :  { %792 = vmatpush3.bf16.msra.mxu1 %v848_v37  ;;  %801 = vmatprep.subr.bf16.mxu0 %v871_v0 }
  0x1c   :  { %793 = vmatprep.subr.bf16.mxu1 %v871_v0 }
  0x1e   :  { %802 = vmatpush3.bf16.msra.mxu0 %v849_v38 }
  0x1f   :  { %794 = vmatpush3.bf16.msra.mxu1 %v850_v39  ;;  %807 = vmatprep.subr.bf16.mxu0 %v871_v0 }
  0x20   :  { %815 = vmatprep.subr.bf16.mxu1 %v871_v0 }
  0x21   :  { %804 = vmatmul.mubr.msk.bf16.vlgmr.msra.gmra.mrb[8].mxu0 %vm88_vm1, %v986_v5 }
  0x22   :  { %808 = vmatpush3.bf16.msra.mxu0 %v851_v40  ;;  %811 = vmatprep.mubr.msk.bf16.mxu0 %vm872_vm0, %v871_v0 }
  0x23   :  { %809 = vmatprep.subr.bf16.mxu0 %v871_v0 }
  0x26   :  { %810 = vmatpush3.bf16.msra.mxu0 %v853_v41 }
  0x27   :  { %827 = vmatprep.subr.bf16.mxu0 %v871_v0 }
  0x29   :  { %812 = vmatmul.mubr.msk.bf16.vlgmr.msra.gmra.mrb[12].mxu0 %vm88_vm1, %v991_v6 }
  0x2a   :  { %831 = vmatprep.mubr.msk.bf16.mxu0 %vm872_vm0, %v871_v0  ;;  %828 = vmatpush3.bf16.msra.mxu0 %v855_v42 }
  0x2b   :  { %829 = vmatprep.subr.bf16.mxu0 %v871_v0 }
  0x2e   :  { %830 = vmatpush3.bf16.msra.mxu0 %v857_v43 }
  0x31   :  { %832 = vmatmul.mubr.msk.bf16.vlgmr.msra.gmra.mrb[16].mxu0 %vm88_vm1, %v986_v5 }
  0xe3   :  { %v126_v7 = vpop.f32.mrb[0].mxu0 }
  0xe4   :  { %v187_v8 = vpop.f32.mrb[0].mxu1  ;;  %v769_v9 = vpop.f32.mrb[1].mxu0 }
  0xe5   :  { %v188_v11 = vadd.f32 %v187_v8, %v126_v7  ;;  %v777_v12 = vpop.f32.mrb[1].mxu1  ;;  %v129_v13 = vpop.f32.mrb[2].mxu0 }
  0xe6   :  { %v190_v14 = vpop.f32.mrb[2].mxu1  ;;  %v770_v15 = vpop.f32.mrb[3].mxu0 }
  0xe7   :  { %v191_v16 = vadd.f32 %v190_v14, %v129_v13  ;;  %v778_v17 = vpop.f32.mrb[3].mxu1  ;;  %v201_v18 = vadd.f32 %v704_v10, %v188_v11 }
  0xe9   :  { %v204_v19 = vsel %vm203_vm2, %v201_v18, 0.0  ;;  %v202_v20 = vadd.f32 %v704_v10, %v191_v16 }
  0xea   :  { %205 = vadd.xlane.f32.xlu0 %v204_v19 }
  0xeb   :  { %v207_v21 = vsel %vm203_vm2, %v202_v20, 0.0 }
  0xec   :  { %v310_v4 = vpop.f32.mrb[4].mxu0 }
  0xed   :  { %v785_v5 = vpop.f32.mrb[5].mxu0 }
  0xee   :  { %208 = vadd.xlane.f32.xlu0 %v207_v21  ;;  %v313_v6 = vpop.f32.mrb[6].mxu0 }
  0xef   :  { %v786_v7 = vpop.f32.mrb[7].mxu0 }
  0xf4   :  { %v435_v8 = vpop.f32.mrb[8].mxu0 }
  0xf5   :  { %v805_v9 = vpop.f32.mrb[9].mxu0 }
  0xf6   :  { %v438_v10 = vpop.f32.mrb[10].mxu0 }
  0xf7   :  { %v806_v11 = vpop.f32.mrb[11].mxu0 }
  0xfc   :  { %v511_v12 = vpop.f32.mrb[12].mxu0 }
  0xfd   :  { %v813_v13 = vpop.f32.mrb[13].mxu0 }
  0xfe   :  { %v514_v14 = vpop.f32.mrb[14].mxu0 }
  0xff   :  { %v814_v15 = vpop.f32.mrb[15].mxu0 }
 0x104   :  { %v633_v16 = vpop.f32.mrb[16].mxu0 }
 0x105   :  { %v833_v17 = vpop.f32.mrb[17].mxu0 }
 0x177   :  { %v206_v22 = vpop.xlane.xlu0 %205 }
 0x178   :  { %v211_v23 = vmul.f32 0.015625, %v206_v22 }
 0x17a   :  { %v1008_v24 = vsub.f32 %v201_v18, %v211_v23  ;;  %v636_v18 = vpop.f32.mrb[18].mxu0 }
 0x17b   :  { %v209_v25 = vpop.xlane.xlu0 %208  ;;  %v834_v19 = vpop.f32.mrb[19].mxu0 }
 0x17c   :  { %v212_v26 = vmul.f32 0.015625, %v209_v25  ;;  %v215_v27 = vmul.f32 %v1008_v24, %v1008_v24 }
 0x17e   :  { %v1012_v28 = vsub.f32 %v202_v20, %v212_v26  ;;  %v217_v29 = vsel %vm203_vm2, %v215_v27, 0.0 }
 0x17f   :  { %218 = vadd.xlane.f32.xlu1 %v217_v29 }
 0x180   :  { %v216_v30 = vmul.f32 %v1012_v28, %v1012_v28 }
 0x182   :  { %v220_v31 = vsel %vm203_vm2, %v216_v30, 0.0 }
 0x183   :  { %221 = vadd.xlane.f32.xlu1 %v220_v31  ;;  %v730_v31 = vld [vmem:[%s1140_s14] ss:$0 sm:$0xff] }
 0x20c   :  { %v219_v44 = vpop.xlane.xlu1 %218 }
 0x20d   :  { %v223_v45 = vmul.f32 0.015625, %v219_v44 }
 0x20f   :  { %v225_v46 = vadd.f32 1e-05, %v223_v45  ;;  %v718_v45 = vld [vmem:[%s1141_s10] ss:$0 sm:$0xff] }
 0x210   :  { %v222_v47 = vpop.xlane.xlu1 %221 }
 0x211   :  { %859 = vrsqrt.f32 %v225_v46  ;;  %v224_v48 = vmul.f32 0.015625, %v222_v47 }
 0x213   :  { %v226_v49 = vadd.f32 1e-05, %v224_v48  ;;  %v733_v48 = vld [vmem:[%s1142_s15] ss:$0 sm:$0xff] }
 0x215   :  { %861 = vrsqrt.f32 %v226_v49 }
 0x21b   :  { %v860_v50 = vpop.eup %859 }
 0x21c   :  { %v229_v52 = vmul.f32 %v860_v50, %v1008_v24 }
 0x21e   :  { %v238_v53 = vmul.f32 %v705_v51, %v229_v52 }
 0x21f   :  { %v862_v54 = vpop.eup %861 }
 0x220   :  { %v230_v56 = vmul.f32 %v862_v54, %v1012_v28  ;;  %v247_v58 = vadd.f32 %v706_v55, %v238_v53 }
 0x222   :  { %v239_v57 = vmul.f32 %v705_v51, %v230_v56  ;;  %v249_v60 = vmax.f32 %v247_v58, 0.0 }
 0x224   :  { %v248_v59 = vadd.f32 %v706_v55, %v239_v57 }
 0x226   :  { %v250_v61 = vmax.f32 %v248_v59, 0.0 }
 0x228   :  { %v251_v63 = vpack.c.bf16 %v250_v61, %v249_v60 }
 0x22a   :  { %796 = vmatmul.mubr.msk.bf16.vlgmr.msra.gmra.mrb[4].mxu1 %vm203_vm2, %v251_v63 }
 0x22b   :  { %816 = vmatpush3.bf16.msra.mxu1 %v852_v62  ;;  %823 = vmatprep.mubr.msk.bf16.mxu1 %vm872_vm0, %v871_v0 }
 0x22c   :  { %817 = vmatprep.subr.bf16.mxu1 %v871_v0 }
 0x22f   :  { %818 = vmatpush3.bf16.msra.mxu1 %v854_v1 }
 0x230   :  { %819 = vmatprep.subr.bf16.mxu1 %v871_v0 }
 0x233   :  { %820 = vmatpush3.bf16.msra.mxu1 %v856_v2 }
 0x234   :  { %821 = vmatprep.subr.bf16.mxu1 %v871_v0  ;;  %v22_v0 = vstv %s1139_s16 }
 0x235   :  { %23 = vst [vmem:[#allocation2] sm:$0x1] %v22_v0 }
 0x237   :  { %822 = vmatpush3.bf16.msra.mxu1 %v858_v3 }
 0x23a   :  { %824 = vmatmul.mubr.msk.bf16.vlgmr.msra.gmra.mrb[8].mxu1 %vm203_vm2, %v251_v63 }
 0x23c   :  { %v734_v57 = vld [vmem:[#allocation2] ss:$0 sm:$0xff] }
 0x2fd   :  { %v378_v20 = vpop.f32.mrb[4].mxu1 }
 0x2fe   :  { %v379_v21 = vadd.f32 %v378_v20, %v310_v4  ;;  %v797_v22 = vpop.f32.mrb[5].mxu1 }
 0x2ff   :  { %v381_v23 = vpop.f32.mrb[6].mxu1 }
 0x300   :  { %v442_v24 = vadd.f32 %v435_v8, %v379_v21  ;;  %v382_v25 = vadd.f32 %v381_v23, %v313_v6  ;;  %v798_v26 = vpop.f32.mrb[7].mxu1 }
 0x302   :  { %v443_v27 = vadd.f32 %v438_v10, %v382_v25  ;;  %v451_v46 = vadd.f32 %v718_v45, %v442_v24 }
 0x304   :  { %v452_v49 = vadd.f32 %v718_v45, %v443_v27 }
 0x30d   :  { %v576_v28 = vpop.f32.mrb[8].mxu1 }
 0x30e   :  { %v577_v29 = vadd.f32 %v576_v28, %v511_v12  ;;  %v825_v30 = vpop.f32.mrb[9].mxu1 }
 0x30f   :  { %v579_v32 = vpop.f32.mrb[10].mxu1 }
 0x310   :  { %v640_v33 = vadd.f32 %v633_v16, %v577_v29  ;;  %v580_v34 = vadd.f32 %v579_v32, %v514_v14  ;;  %v826_v35 = vpop.f32.mrb[11].mxu1 }
 0x312   :  { %v649_v36 = vadd.f32 %v730_v31, %v640_v33  ;;  %v641_v37 = vadd.f32 %v636_v18, %v580_v34 }
 0x314   :  { %v731_v38 = vmul.f32 -1.442695, %v649_v36  ;;  %v650_v39 = vadd.f32 %v730_v31, %v641_v37 }
 0x316   :  { %863 = vpow2.f32 %v731_v38  ;;  %v732_v40 = vmul.f32 -1.442695, %v650_v39 }
 0x318   :  { %865 = vpow2.f32 %v732_v40 }
 0x320   :  { %v864_v41 = vpop.eup %863 }
 0x321   :  { %v657_v42 = vadd.f32 1.0, %v864_v41 }
 0x322   :  { %v866_v43 = vpop.eup %865 }
 0x323   :  { %867 = vrcp.f32 %v657_v42  ;;  %v658_v44 = vadd.f32 1.0, %v866_v43 }
 0x325   :  { %869 = vrcp.f32 %v658_v44 }
 0x32d   :  { %v868_v47 = vpop.eup %867 }
 0x32e   :  { %v663_v50 = vmul.f32 %v868_v47, %v451_v46 }
 0x32f   :  { %v870_v51 = vpop.eup %869 }
 0x330   :  { %v672_v52 = vmul.f32 %v733_v48, %v663_v50  ;;  %v664_v53 = vmul.f32 %v870_v51, %v452_v49 }
 0x332   :  { %v674_v54 = vsel %vm203_vm2, %v672_v52, 0.0  ;;  %v673_v55 = vmul.f32 %v733_v48, %v664_v53 }
 0x333   :  { %675 = vadd.xlane.f32.xlu0 %v674_v54 }
 0x334   :  { %v677_v56 = vsel %vm203_vm2, %v673_v55, 0.0 }
 0x335   :  { %678 = vadd.xlane.f32.xlu1 %v677_v56 }
 0x3c0   :  { %v676_v58 = vpop.xlane.xlu0 %675 }
 0x3c1   :  { %v687_v59 = vadd.f32 %v734_v57, %v676_v58 }
 0x3c2   :  { %v679_v60 = vpop.xlane.xlu1 %678 }
 0x3c3   :  { %690 = vst.msk [vmem:[%s1143_s17] sm:$0xff] %vm689_vm3, %v687_v59  ;;  %v688_v61 = vadd.f32 %v734_v57, %v679_v60 }
 0x3c5   :  { %691 = vst.msk [vmem:[%s1143_s17 + $0x8] sm:$0xff] %vm689_vm3, %v688_v61 }

</bundles_post_ra>
